<compile_context>
chip_gen: v7x
topology: tpu7x:2x2x1
jax: 0.10.0
libtpu: 0.0.40
codegen_flags: <defaults>
</compile_context>

<pallas_src>
import functools

import jax
import jax.numpy as jnp
from jax.experimental import pallas as pl
from jax.experimental.pallas import tpu as pltpu

_LANES = 128


def _sum_kernel(p_ref, out_ref, *, rows_valid, n_inner):
    # p_ref  : (tile_rows, 128) f32 prediction tile (lane-dense)
    # out_ref: (1, 8, 128)      f32 per-outer-chunk partial sum (resident acc)
    o = pl.program_id(0)
    i = pl.program_id(1)
    tile_rows = p_ref.shape[0]

    @pl.when(i == 0)
    def _():
        out_ref[...] = jnp.zeros_like(out_ref)

    # Logical (unclamped) tile index -> global row offset of this tile.
    tile_idx = o * n_inner + i
    row0 = tile_idx * tile_rows
    row_ids = row0 + jax.lax.broadcasted_iota(jnp.int32, (tile_rows, 1), 0)

    # Mask stale rows of the partial last tile and fully-out-of-range (clamped)
    # tiles; valid rows contribute p, everything else contributes 0.
    p = jnp.where(row_ids < rows_valid, p_ref[...], 0.0)

    # Tree-reduce the tile to a single (8, 128) vreg (pure VPU adds, no XLU),
    # and accumulate into the resident output block.
    out_ref[...] += p.reshape(tile_rows // 8, 8, _LANES).sum(axis=0)[None]


def _default_parallel_chunks():
    """2 outer chunks on dual-TensorCore chips (v7x / megacore), else 1."""
    try:
        kind = jax.devices()[0].device_kind.lower()
    except Exception:
        return 1
    if "lite" in kind or "v5e" in kind or "v6e" in kind:
        return 1
    if any(tag in kind for tag in ("v4", "v5p", "7")):
        return 2
    return 1


def classification_score(predictions, class_id, coefficient=1.0, *,
                         block_rows=4096, parallel_chunks=None,
                         min_pallas_elems=1 << 20):
    """coefficient * mean(class_id * p + (1 - class_id) * (1 - p))."""
    c = float(class_id)
    coefficient = float(coefficient)

    p = jnp.reshape(predictions, (-1,)).astype(jnp.float32)
    n = p.shape[0]
    rows_main = n // _LANES

    if n < min_pallas_elems or rows_main < 8:
        # Small-input fast path: a single fused XLA reduce beats a kernel launch.
        s = jnp.sum(p)
    else:
        n_main = rows_main * _LANES
        # Lane-dense view; zero-copy when n is a multiple of 128 (the common
        # large-input case).  No padding to the tile grid is ever materialized.
        p_main = (p if n_main == n else p[:n_main]).reshape(rows_main, _LANES)

        tile_rows = max(8, (min(block_rows, rows_main) // 8) * 8)
        n_tiles = pl.cdiv(rows_main, tile_rows)

        n_outer = parallel_chunks if parallel_chunks is not None \
            else _default_parallel_chunks()
        n_outer = max(1, min(int(n_outer), n_tiles))
        n_inner = pl.cdiv(n_tiles, n_outer)
        last_tile = n_tiles - 1

        kernel = functools.partial(
            _sum_kernel, rows_valid=rows_main, n_inner=n_inner)

        partials = pl.pallas_call(
            kernel,
            out_shape=jax.ShapeDtypeStruct((n_outer, 8, _LANES), jnp.float32),
            grid=(n_outer, n_inner),
            in_specs=[
                # Clamp so no block index points past the array; clamped tiles
                # are fully masked in-kernel (their logical rows are invalid).
                pl.BlockSpec(
                    (tile_rows, _LANES),
                    lambda o, i: (jnp.minimum(o * n_inner + i, last_tile), 0)),
            ],
            out_specs=pl.BlockSpec((1, 8, _LANES), lambda o, i: (o, 0, 0)),
            compiler_params=pltpu.CompilerParams(
                dimension_semantics=("parallel", "arbitrary")),
        )(p_main)

        s = jnp.sum(partials)
        if n_main != n:
            # Ragged tail (< 128 elements): trivial jnp reduce.
            s = s + jnp.sum(p[n_main:])

    # loss = (2c-1) * mean(p) + (1-c); masked/zero tail contributes nothing.
    loss = ((2.0 * c - 1.0) * s + (1.0 - c) * n) / n
    return coefficient * loss


class ClassificationScore:
    """JAX/Pallas port of the PyTorch ClassificationScore module."""

    def __init__(self, class_id, coefficient=1.0):
        self.class_id = class_id
        self.coefficient = coefficient

    def __call__(self, predictions, adv_patch):
        # `adv_patch` is unused by the reference forward pass.
        return classification_score(
            predictions, self.class_id, self.coefficient)


def _reference(predictions, class_id, coefficient):
    p = jnp.asarray(predictions, jnp.float32)
    return coefficient * jnp.mean(class_id * p + (1 - class_id) * (1 - p))


if __name__ == "__main__":
    key = jax.random.PRNGKey(0)
    k1, k2, k3 = jax.random.split(key, 3)

    # Small demo shapes (module use: per-detection class probabilities + patch).
    predictions = jax.random.uniform(k1, (4, 100), dtype=jnp.float32)
    adv_patch = jax.random.uniform(k2, (16, 16, 3), dtype=jnp.float32)

    for class_id, coefficient in ((1, 1.0), (0, 2.5)):
        module = ClassificationScore(class_id, coefficient=coefficient)
        out = jax.block_until_ready(module(predictions, adv_patch))
        ref = _reference(predictions, class_id, coefficient)
        assert jnp.allclose(out, ref, rtol=1e-5, atol=1e-6), (class_id, out, ref)

    # Exercise the Pallas path on a kernel-sized, ragged (n % 128 != 0) input.
    big = jax.random.uniform(k3, (3, 517, 129), dtype=jnp.float32)  # 200,079 elems
    for class_id, coefficient in ((1, 1.0), (0, 2.5)):
        out = jax.block_until_ready(
            classification_score(big, class_id, coefficient,
                                 block_rows=256, min_pallas_elems=0))
        ref = _reference(big, class_id, coefficient)
        assert jnp.allclose(out, ref, rtol=1e-5, atol=1e-6), (class_id, out, ref)

    print("KERNEL_OK")
</pallas_src>

<mosaic_0001>
module attributes {stable_mosaic.version = 11 : i64} {
  func.func @_sum_kernel(%arg0: i32, %arg1: i32, %arg2: memref<256x128xf32, #tpu.memory_space<vmem>>, %arg3: memref<1x8x128xf32, #tpu.memory_space<vmem>>) attributes {dimension_semantics = [#tpu.dimension_semantics<parallel>, #tpu.dimension_semantics<arbitrary>], iteration_bounds = array<i64: 1, 7>, scalar_prefetch = 0 : i64, scratch_operands = 0 : i64, tpu.core_type = #tpu.core_type<tc>, window_params = [{transform_indices = @transform_0, window_bounds = array<i64: 256, 128>}, {transform_indices = @transform_1, window_bounds = array<i64: 1, 8, 128>}]} {
    %c0_i32 = arith.constant 0 : i32
    %0 = arith.cmpi eq, %arg1, %c0_i32 : i32
    %1 = arith.extui %0 : i1 to i32
    %c0_i32_0 = arith.constant 0 : i32
    %2 = arith.cmpi ne, %1, %c0_i32_0 : i32
    scf.if %2 {
      %cst_9 = arith.constant 0.000000e+00 : f32
      %22 = vector.broadcast %cst_9 : f32 to vector<1x8x128xf32>
      %c0_10 = arith.constant 0 : index
      %c0_11 = arith.constant 0 : index
      %c0_12 = arith.constant 0 : index
      %23 = vector.load %arg3[%c0_10, %c0_11, %c0_12] : memref<1x8x128xf32, #tpu.memory_space<vmem>>, vector<1x8x128xf32>
      tpu.vector_store %arg3[%c0_10, %c0_11, %c0_12], %22 {strides = array<i32>} : memref<1x8x128xf32, #tpu.memory_space<vmem>>, vector<1x8x128xf32>,
    } else {
    }
    %c7_i32 = arith.constant 7 : i32
    %3 = arith.muli %arg0, %c7_i32 : i32
    %4 = arith.addi %3, %arg1 : i32
    %c256_i32 = arith.constant 256 : i32
    %5 = arith.muli %4, %c256_i32 : i32
    %6 = tpu.iota {dimensions = array<i32: 0>} : vector<256x1xi32>
    %7 = vector.broadcast %5 : i32 to vector<256x1xi32>
    %8 = arith.addi %7, %6 : vector<256x1xi32>
    %c1563_i32 = arith.constant 1563 : i32
    %9 = vector.broadcast %c1563_i32 : i32 to vector<256x1xi32>
    %10 = arith.cmpi slt, %8, %9 : vector<256x1xi32>
    %c0 = arith.constant 0 : index
    %c0_1 = arith.constant 0 : index
    %11 = vector.load %arg2[%c0, %c0_1] : memref<256x128xf32, #tpu.memory_space<vmem>>, vector<256x128xf32>
    %cst = arith.constant 0.000000e+00 : f32
    %12 = vector.shape_cast %10 : vector<256x1xi1> to vector<256x1xi1>
    %13 = vector.broadcast %12 : vector<256x1xi1> to vector<256x128xi1>
    %14 = vector.broadcast %cst : f32 to vector<256x128xf32>
    %15 = arith.select %13, %11, %14 : vector<256x128xi1>, vector<256x128xf32>
    %c0_2 = arith.constant 0 : index
    %c0_3 = arith.constant 0 : index
    %c0_4 = arith.constant 0 : index
    %16 = vector.load %arg3[%c0_2, %c0_3, %c0_4] : memref<1x8x128xf32, #tpu.memory_space<vmem>>, vector<1x8x128xf32>
    %17 = vector.shape_cast %15 : vector<256x128xf32> to vector<32x8x128xf32>
    %cst_5 = arith.constant dense<0.000000e+00> : vector<8x128xf32>
    %18 = vector.multi_reduction <add>, %17, %cst_5 [0] : vector<32x8x128xf32> to vector<8x128xf32>
    %19 = vector.shape_cast %18 : vector<8x128xf32> to vector<1x8x128xf32>
    %20 = arith.addf %16, %19 : vector<1x8x128xf32>
    %c0_6 = arith.constant 0 : index
    %c0_7 = arith.constant 0 : index
    %c0_8 = arith.constant 0 : index
    %21 = vector.load %arg3[%c0_6, %c0_7, %c0_8] : memref<1x8x128xf32, #tpu.memory_space<vmem>>, vector<1x8x128xf32>
    tpu.vector_store %arg3[%c0_6, %c0_7, %c0_8], %20 {strides = array<i32>} : memref<1x8x128xf32, #tpu.memory_space<vmem>>, vector<1x8x128xf32>,
    return
  }
  func.func @transform_0(%arg0: i32, %arg1: i32) -> (i32, i32) {
    %c7_i32 = arith.constant 7 : i32
    %0 = arith.muli %arg0, %c7_i32 : i32
    %1 = arith.addi %0, %arg1 : i32
    %c6_i32 = arith.constant 6 : i32
    %2 = arith.minsi %1, %c6_i32 : i32
    %c0_i32 = arith.constant 0 : i32
    %c0_i32_0 = arith.constant 0 : i32
    return %2, %c0_i32 : i32, i32
  }
  func.func @transform_1(%arg0: i32, %arg1: i32) -> (i32, i32, i32) {
    %c0_i32 = arith.constant 0 : i32
    %c0_i32_0 = arith.constant 0 : i32
    %c0_i32_1 = arith.constant 0 : i32
    return %arg0, %c0_i32, %c0_i32_0 : i32, i32, i32
  }
}

</mosaic_0001>

<bundles_post_ra>
// kernel: tpu_custom_call.1
= control target key start
LH: loop header
LB: loop body
LE: loop exit
PB: predicated region body
PF: predicated region fallthrough
CT: control target
= control target key end

     0   :  { %6 = vsyncpa [#allocation3], 0  ;;  %s961_s0 = inlined_call_operand.hbm [shape: f32[1563,128], index: 0, kind: input, shape index: {}]   ;;  %s962_s1 = inlined_call_operand.hbm [shape: f32[1,8,128], index: 1, kind: output, shape index: {}]  }
   0x1   :  { %8 = vsyncpa [#allocation3 + $0x1], 0 }
   0x2   :  { %9 = vsyncpa [#allocation4], 0  ;;  %s708_s6 = smov 0   ;;  %s710_s7 = smov 0  }
   0x3   :  { %s712_s8 = smov 0   ;;  %s714_s9 = smov 0  }
   0x4   :  { %s716_s10 = smov 0   ;;  %s718_s11 = smov 0  }
   0x5 LB: > { %s24_s12 = sadd.s32 1, %s687_s10  ;;  %p33_p1 = scmp.lt.s32.totalorder %s687_s10, 6  ;;  %s691_s11 = sphi %s718_s11, %s15_s11   ;;  %s687_s10 = sphi %s716_s10, %s969_s10   ;;  %s683_s9 = sphi %s714_s9, %s968_s9   ;;  %s679_s8 = sphi %s712_s8, %s967_s8   ;;  %s675_s7 = sphi %s710_s7, %s966_s7   ;;  %s671_s6 = sphi %s708_s6, %s965_s6  }
   0x6   : > { %p25_p0 = scmp.ge.s32.totalorder %s24_s12, 7  ;;  %s505_s13 = sadd.s32 4294967295, %s691_s11  }
   0x7   : > { %p49_p2 = scmp.ne.s32.totalorder %s679_s8, %s675_s7  ;;  %p50_p4 = scmp.eq.s32.totalorder %s691_s11, 0 }
   0x8   : > { %s971_s12 = smov (%p25_p0, %s24_s12), 0  ;;  %p55_p5 = scmp.ne.s32.totalorder %s675_s7, %s671_s6 }
   0x9   : > { %s744_s14 = scalar_select %p33_p1, %s687_s10, 6 }
   0xa   : > { %p37_p3 = scmp.lt.s32.totalorder %s971_s12, 6  ;;  %p56_p6 = scmp.eq.s32.totalorder %s505_s13, 0 }
   0xb   : > { %p51_p7 = por %p50_p4, %p49_p2  ;;  %s42_s18 = sadd.s32 1, %s679_s8 }
   0xc   : > { %s38_s15 = scalar_select %p37_p3, %s971_s12, 6 }
   0xd   : > { %p752_p8 = por %p56_p6, %p55_p5  ;;  %p507_p10 = scmp.ge.s32.totalorder %s691_s11, 7 }
   0xe   : > { %s39_s17 = ssub.s32 %s744_s14, %s38_s15 }
   0xf   : > { %p40_p9 = scmp.eq.s32.totalorder %s39_s17, 0  ;;  %101 = sbr.rel (%p507_p10) target bundleno = 57 (0x39), region = 16 }
  0x11   : > { %s759_s19 = scalar_select %p40_p9, %s679_s8, %s42_s18  }
  0x16   : > { %104 = sbr.rel (!%p51_p7) target bundleno = 57 (0x39), region = 20  ;;  %s105_s20 = sand.u32 (%p51_p7), 1, %s679_s8  }
  0x17   : > { %s509_s21 = sshll.u32 (%p51_p7), %s744_s14, 5  ;;  %s508_s22 = sshll.u32 (%p51_p7), %s105_s20, 8 }
  0x18   : > { %s115_s23 = ssub.s32 (%p51_p7), 196, %s509_s21  ;;  %s767_s26 = scalar_lea.sflag (%p51_p7), [#allocation3], %s105_s20 }
  0x19   : > { %p116_p11 = scmp.lt.s32.totalorder (%p51_p7), %s115_s23, 32  ;;  %s109_s27 = scalar_lea.vmem (%p51_p7), [#allocation2], %s508_s22 }
  0x1d   : > { %s973_s23 = smov (!%p116_p11, %s115_s23), 32 }
  0x1e   : > { %s764_s24 = sshll.u32 %s973_s23, 7 }
  0x1f   : > { %s120_s25 = ssub.s32 4096, %s764_s24 }
  0x20   : > { %121 = vsyncadd %s767_s26, %s120_s25  ;;  %p511_p12 = scmp.ne.s32.totalorder %s764_s24, 0  ;;  %s523_s28 = sshll.u32 %s744_s14, 12 }
  0x21   : > { %s775_s2 = scalar_lea.hbm %s961_s0, %s523_s28  ;;  %s126_s3 = sshll.u32 %s109_s27, 4  ;;  %s777_s3 = int_to_ptr.vmem [resolvable:$true] %s126_s3 }
  0x22   : > { %s583_s4 = scalar_lea.hbm %s775_s2, %s764_s24  ;;  %s587_s14 = scalar_lea.hbm %s961_s0, 25088 }
  0x23   : > { %p584_p13 = scmp.ne.s32.totalorder %s775_s2, %s583_s4  ;;  %p588_p2 = scmp.lt.u32.totalorder %s775_s2, %s961_s0 }
  0x24   : > { %p589_p3 = scmp.lt.u32.totalorder %s587_s14, %s583_s4  ;;  %p591_p5 = scmp.lt.u32.totalorder %s583_s4, %s775_s2 }
  0x25   : > { %p585_p0 = pnand %p584_p13, %p511_p12 }
  0x26   : > { %p590_p4 = por %p589_p3, %p588_p2 }
  0x27   : > { %p586_p1 = pneg %p585_p0 }
  0x28   : > { %p592_p6 = por %p591_p5, %p590_p4 }
  0x2a   : > { %p593_p7 = pnand %p592_p6, %p586_p1 }
  0x2c   : > { %596 = shalt.err (!%p593_p7)
}
  0x2d   : > { %s597_s18 = scalar_lea.vmem %s777_s3, %s764_s24  ;;  %s693_s20 = smov [#allocation2]  }
  0x2e   : > { %p598_p9 = scmp.ne.s32.totalorder %s777_s3, %s597_s18  ;;  %s601_s21 = sshll.u32 %s693_s20, 4  ;;  %s602_s21 = int_to_ptr.vmem [resolvable:$false] %s601_s21 }
  0x2f   : > { %s603_s22 = scalar_lea.vmem %s602_s21, 8192  ;;  %p604_p13 = scmp.lt.s32.totalorder %s777_s3, %s602_s21 }
  0x30   : > { %p599_p10 = pnand %p598_p9, %p511_p12  ;;  %p605_p0 = scmp.lt.s32.totalorder %s603_s22, %s597_s18 }
  0x32   : > { %p600_p11 = pneg %p599_p10  ;;  %p606_p2 = por %p605_p0, %p604_p13 }
  0x34   : > { %p607_p3 = pnand %p606_p2, %p600_p11 }
  0x36   : > { %610 = shalt.err (!%p607_p3)
}
  0x37   : > { %s694_s23 = smov 128   ;;  %s695_s25 = smov 8  }
  0x38   : > { %132 = dma.hbm_to_vmem [thread:$0]  (%p511_p12), %s775_s2, %s764_s24, %s777_s3, %s767_s26, %s694_s23, %s694_s23, %s695_s25  }
  0x39 PF: > { %p515_p1 = scmp.ge.s32.totalorder %s691_s11, 1  ;;  %p134_p4 = scmp.lt.s32.totalorder %s691_s11, 8 }
  0x3b   : > { %p135_p5 = pnand %p515_p1, %p134_p4 }
  0x3c   : > { %s140_s27 = sand.u32 (!%p135_p5), 1, %s675_s7  }
  0x3d   : > { %138 = sbr.rel (%p135_p5) target bundleno = 167 (0xa7), region = 24  ;;  %s516_s28 = sshll.u32 (!%p135_p5), %s140_s27, 8 }
  0x3e   : > { %s141_s29 = scalar_lea.sflag (!%p135_p5), [#allocation3], %s140_s27  ;;  %s807_s30 = scalar_lea.vmem (!%p135_p5), [#allocation2], %s516_s28 }
  0x44   : > { %662 = dma.done.wait (%p752_p8), %s141_s29, 4096  }
  0x45   : > { %664 = vsyncadd (%p752_p8), %s141_s29, 4294963200  ;;  %p517_p12 = scmp.ne.s32.totalorder %s683_s9, 0 }
  0x46   : > { %v696_v0 = vmov (!%p517_p12), 0.0  }
  0x47   : > { %170 = sbr.rel (%p517_p12) target bundleno = 78 (0x4e), region = 32  ;;  %171 = vst [vmem:[#allocation5] sm:$0xff] (!%p517_p12), %v696_v0 }
  0x4e PF: > { %v175_v1 = vlaneseq  ;;  %s518_s24 = sshll.u32 %s683_s9, 8  ;;  %v273_v13 = vld [vmem:[%s807_s30] sm:$0xff]  ;;  %v274_v14 = vld [vmem:[%s807_s30 + $0x8] sm:$0xff]  ;;  %v275_v17 = vld [vmem:[%s807_s30 + $0x10] sm:$0xff]  ;;  %s697_s9 = smov [#allocation5]  }
  0x4f   : > { %v818_v4 = vstv %s518_s24  ;;  %v276_v22 = vld [vmem:[%s807_s30 + $0x18] sm:$0xff]  ;;  %v277_v26 = vld [vmem:[%s807_s30 + $0x20] sm:$0xff]  ;;  %v278_v31 = vld [vmem:[%s807_s30 + $0x28] sm:$0xff]  ;;  %s444_s16 = sshll.u32 %s697_s9, 4  ;;  %p917_p8 = scmp.eq.s32.totalorder %s505_s13, 6  ;;  %s445_s16 = int_to_ptr.vmem [resolvable:$true] %s444_s16 }
  0x50   : > { %v814_v2 = vshrl.u32 %v175_v1, 7  ;;  %v279_v36 = vld [vmem:[%s807_s30 + $0x30] sm:$0xff]  ;;  %v280_v41 = vld [vmem:[%s807_s30 + $0x38] sm:$0xff]  ;;  %v281_v46 = vld [vmem:[%s807_s30 + $0x40] sm:$0xff]  ;;  %s611_s2 = scalar_lea.vmem %s445_s16, 128  ;;  %p618_p10 = scmp.lt.s32.totalorder %s445_s16, %s445_s16 }
  0x51   : > { %v282_v51 = vld [vmem:[%s807_s30 + $0x48] sm:$0xff]  ;;  %v283_v56 = vld [vmem:[%s807_s30 + $0x50] sm:$0xff]  ;;  %v284_v61 = vld [vmem:[%s807_s30 + $0x58] sm:$0xff]  ;;  %p612_p6 = scmp.ne.s32.totalorder %s445_s16, %s611_s2  ;;  %p619_p11 = scmp.lt.s32.totalorder %s611_s2, %s611_s2 }
  0x52   : > { %v177_v3 = vadd.s32 8, %v814_v2  ;;  %v178_v5 = vadd.s32 16, %v814_v2  ;;  %v179_v6 = vadd.s32 24, %v814_v2  ;;  %v209_v7 = vadd.s32 %v818_v4, %v814_v2 }
  0x53   : > { %v180_v9 = vadd.s32 32, %v814_v2  ;;  %v181_v11 = vadd.s32 40, %v814_v2  ;;  %v182_v15 = vadd.s32 48, %v814_v2  ;;  %v183_v20 = vadd.s32 56, %v814_v2  ;;  %p613_p7 = pnand %p612_p6, %p917_p8  ;;  %p620_p13 = por %p619_p11, %p618_p10 }
  0x54   : > { %v210_v8 = vadd.s32 %v818_v4, %v177_v3  ;;  %v211_v10 = vadd.s32 %v818_v4, %v178_v5  ;;  %v212_v12 = vadd.s32 %v818_v4, %v179_v6  ;;  %vm241_vm0 = vcmp.lt.s32.totalorder %v209_v7, 1563  ;;  %v285_v3 = vld [vmem:[%s807_s30 + $0x60] sm:$0xff] }
  0x55   : > { %v213_v16 = vadd.s32 %v818_v4, %v180_v9  ;;  %v369_v18 = vsel %vm241_vm0, %v273_v13, 0.0  ;;  %v214_v21 = vadd.s32 %v818_v4, %v181_v11  ;;  %v184_v24 = vadd.s32 64, %v814_v2  ;;  %v286_v9 = vld [vmem:[%s807_s30 + $0x68] sm:$0xff]  ;;  %p614_p9 = pneg %p613_p7 }
  0x56   : > { %vm242_vm1 = vcmp.lt.s32.totalorder %v210_v8, 1563  ;;  %vm243_vm2 = vcmp.lt.s32.totalorder %v211_v10, 1563  ;;  %vm244_vm3 = vcmp.lt.s32.totalorder %v212_v12, 1563  ;;  %v215_v25 = vadd.s32 %v818_v4, %v182_v15 }
  0x57   : > { %v370_v19 = vsel %vm242_vm1, %v274_v14, 0.0  ;;  %v371_v23 = vsel %vm243_vm2, %v275_v17, 0.0  ;;  %vm245_vm4 = vcmp.lt.s32.totalorder %v213_v16, 1563  ;;  %v372_v28 = vsel %vm244_vm3, %v276_v22, 0.0  ;;  %v287_v14 = vld [vmem:[%s807_s30 + $0x70] sm:$0xff]  ;;  %p621_p0 = pnand %p620_p13, %p614_p9 }
  0x58   : > { %v402_v27 = vadd.f32 %v370_v19, %v369_v18  ;;  %v185_v29 = vadd.s32 72, %v814_v2  ;;  %v216_v30 = vadd.s32 %v818_v4, %v183_v20  ;;  %vm246_vm5 = vcmp.lt.s32.totalorder %v214_v21, 1563  ;;  %v288_v19 = vld [vmem:[%s807_s30 + $0x78] sm:$0xff] }
  0x59   : > { %v373_v33 = vsel %vm245_vm4, %v277_v26, 0.0  ;;  %v186_v34 = vadd.s32 80, %v814_v2  ;;  %v217_v35 = vadd.s32 %v818_v4, %v184_v24  ;;  %vm247_vm6 = vcmp.lt.s32.totalorder %v215_v25, 1563  ;;  %v289_v24 = vld [vmem:[%s807_s30 + $0x80] sm:$0xff] }
  0x5a   : > { %v403_v32 = vadd.f32 %v402_v27, %v371_v23  ;;  %v374_v38 = vsel %vm246_vm5, %v278_v31, 0.0  ;;  %v187_v39 = vadd.s32 88, %v814_v2  ;;  %v218_v40 = vadd.s32 %v818_v4, %v185_v29  ;;  %v290_v29 = vld [vmem:[%s807_s30 + $0x88] sm:$0xff] }
  0x5b   : > { %vm248_vm7 = vcmp.lt.s32.totalorder %v216_v30, 1563  ;;  %v375_v43 = vsel %vm247_vm6, %v279_v36, 0.0  ;;  %v188_v44 = vadd.s32 96, %v814_v2  ;;  %v219_v45 = vadd.s32 %v818_v4, %v186_v34  ;;  %v291_v34 = vld [vmem:[%s807_s30 + $0x90] sm:$0xff] }
  0x5c   : > { %v404_v37 = vadd.f32 %v403_v32, %v372_v28  ;;  %vm249_vm8 = vcmp.lt.s32.totalorder %v217_v35, 1563  ;;  %v376_v48 = vsel %vm248_vm7, %v280_v41, 0.0  ;;  %v189_v49 = vadd.s32 104, %v814_v2 }
  0x5d   : > { %v220_v50 = vadd.s32 %v818_v4, %v187_v39  ;;  %vm250_vm9 = vcmp.lt.s32.totalorder %v218_v40, 1563  ;;  %v377_v53 = vsel %vm249_vm8, %v281_v46, 0.0  ;;  %v190_v54 = vadd.s32 112, %v814_v2  ;;  %v292_v39 = vld [vmem:[%s807_s30 + $0x98] sm:$0xff] }
  0x5e   : > { %v405_v42 = vadd.f32 %v404_v37, %v373_v33  ;;  %v221_v55 = vadd.s32 %v818_v4, %v188_v44  ;;  %vm251_vm10 = vcmp.lt.s32.totalorder %v219_v45, 1563  ;;  %v378_v58 = vsel %vm250_vm9, %v282_v51, 0.0  ;;  %v293_v44 = vld [vmem:[%s807_s30 + $0xa0] sm:$0xff] }
  0x5f   : > { %v191_v59 = vadd.s32 120, %v814_v2  ;;  %v222_v60 = vadd.s32 %v818_v4, %v189_v49  ;;  %vm252_vm11 = vcmp.lt.s32.totalorder %v220_v50, 1563  ;;  %v379_v63 = vsel %vm251_vm10, %v283_v56, 0.0  ;;  %v294_v49 = vld [vmem:[%s807_s30 + $0xa8] sm:$0xff] }
  0x60   : > { %v406_v47 = vadd.f32 %v405_v42, %v374_v38  ;;  %v192_v0 = vadd.s32 128, %v814_v2  ;;  %v223_v1 = vadd.s32 %v818_v4, %v190_v54  ;;  %vm253_vm12 = vcmp.lt.s32.totalorder %v221_v55, 1563  ;;  %v295_v54 = vld [vmem:[%s807_s30 + $0xb0] sm:$0xff] }
  0x61   : > { %v380_v6 = vsel %vm252_vm11, %v284_v61, 0.0  ;;  %v193_v7 = vadd.s32 136, %v814_v2  ;;  %v224_v8 = vadd.s32 %v818_v4, %v191_v59  ;;  %vm254_vm13 = vcmp.lt.s32.totalorder %v222_v60, 1563  ;;  %v296_v59 = vld [vmem:[%s807_s30 + $0xb8] sm:$0xff] }
  0x62   : > { %v407_v52 = vadd.f32 %v406_v47, %v375_v43  ;;  %v381_v11 = vsel %vm253_vm12, %v285_v3, 0.0  ;;  %v194_v12 = vadd.s32 144, %v814_v2  ;;  %v225_v13 = vadd.s32 %v818_v4, %v192_v0  ;;  %v297_v0 = vld [vmem:[%s807_s30 + $0xc0] sm:$0xff] }
  0x63   : > { %vm255_vm14 = vcmp.lt.s32.totalorder %v223_v1, 1563  ;;  %v382_v16 = vsel %vm254_vm13, %v286_v9, 0.0  ;;  %v195_v17 = vadd.s32 152, %v814_v2  ;;  %v226_v18 = vadd.s32 %v818_v4, %v193_v7  ;;  %v298_v7 = vld [vmem:[%s807_s30 + $0xc8] sm:$0xff] }
  0x64   : > { %v408_v57 = vadd.f32 %v407_v52, %v376_v48  ;;  %vm256_vm15 = vcmp.lt.s32.totalorder %v224_v8, 1563  ;;  %v383_v21 = vsel %vm255_vm14, %v287_v14, 0.0  ;;  %v196_v22 = vadd.s32 160, %v814_v2 }
  0x65   : > { %v227_v23 = vadd.s32 %v818_v4, %v194_v12  ;;  %vm257_vm0 = vcmp.lt.s32.totalorder %v225_v13, 1563  ;;  %v384_v26 = vsel %vm256_vm15, %v288_v19, 0.0  ;;  %v197_v27 = vadd.s32 168, %v814_v2  ;;  %v299_v12 = vld [vmem:[%s807_s30 + $0xd0] sm:$0xff] }
  0x66   : > { %v409_v62 = vadd.f32 %v408_v57, %v377_v53  ;;  %v228_v28 = vadd.s32 %v818_v4, %v195_v17  ;;  %vm258_vm1 = vcmp.lt.s32.totalorder %v226_v18, 1563  ;;  %v385_v31 = vsel %vm257_vm0, %v289_v24, 0.0  ;;  %v300_v17 = vld [vmem:[%s807_s30 + $0xd8] sm:$0xff] }
  0x67   : > { %v198_v32 = vadd.s32 176, %v814_v2  ;;  %v229_v33 = vadd.s32 %v818_v4, %v196_v22  ;;  %vm259_vm2 = vcmp.lt.s32.totalorder %v227_v23, 1563  ;;  %v386_v36 = vsel %vm258_vm1, %v290_v29, 0.0 }
  0x68   : > { %v410_v5 = vadd.f32 %v409_v62, %v378_v58  ;;  %v199_v37 = vadd.s32 184, %v814_v2  ;;  %v230_v38 = vadd.s32 %v818_v4, %v197_v27  ;;  %vm260_vm3 = vcmp.lt.s32.totalorder %v228_v28, 1563  ;;  %v303_v27 = vld [vmem:[%s807_s30 + $0xf0] sm:$0xff] }
  0x69   : > { %v387_v41 = vsel %vm259_vm2, %v291_v34, 0.0  ;;  %v200_v42 = vadd.s32 192, %v814_v2  ;;  %v231_v43 = vadd.s32 %v818_v4, %v198_v32  ;;  %vm261_vm4 = vcmp.lt.s32.totalorder %v229_v33, 1563 }
  0x6a   : > { %v411_v10 = vadd.f32 %v410_v5, %v379_v63  ;;  %v388_v46 = vsel %vm260_vm3, %v292_v39, 0.0  ;;  %v201_v47 = vadd.s32 200, %v814_v2  ;;  %v232_v48 = vadd.s32 %v818_v4, %v199_v37 }
  0x6b   : > { %vm262_vm5 = vcmp.lt.s32.totalorder %v230_v38, 1563  ;;  %v389_v51 = vsel %vm261_vm4, %v293_v44, 0.0  ;;  %v202_v52 = vadd.s32 208, %v814_v2  ;;  %v233_v53 = vadd.s32 %v818_v4, %v200_v42 }
  0x6c   : > { %v412_v15 = vadd.f32 %v411_v10, %v380_v6  ;;  %vm263_vm6 = vcmp.lt.s32.totalorder %v231_v43, 1563  ;;  %v390_v56 = vsel %vm262_vm5, %v294_v49, 0.0  ;;  %v203_v57 = vadd.s32 216, %v814_v2 }
  0x6d   : > { %v234_v58 = vadd.s32 %v818_v4, %v201_v47  ;;  %vm264_vm7 = vcmp.lt.s32.totalorder %v232_v48, 1563  ;;  %v391_v61 = vsel %vm263_vm6, %v295_v54, 0.0  ;;  %v204_v62 = vadd.s32 224, %v814_v2 }
  0x6e   : > { %v413_v20 = vadd.f32 %v412_v15, %v381_v11  ;;  %v235_v63 = vadd.s32 %v818_v4, %v202_v52  ;;  %vm265_vm8 = vcmp.lt.s32.totalorder %v233_v53, 1563  ;;  %v392_v3 = vsel %vm264_vm7, %v296_v59, 0.0 }
  0x6f   : > { %v205_v5 = vadd.s32 232, %v814_v2  ;;  %v236_v6 = vadd.s32 %v818_v4, %v203_v57  ;;  %vm266_vm9 = vcmp.lt.s32.totalorder %v234_v58, 1563  ;;  %v393_v9 = vsel %vm265_vm8, %v297_v0, 0.0 }
  0x70   : > { %v414_v25 = vadd.f32 %v413_v20, %v382_v16  ;;  %v206_v10 = vadd.s32 240, %v814_v2  ;;  %v237_v11 = vadd.s32 %v818_v4, %v204_v62  ;;  %vm267_vm10 = vcmp.lt.s32.totalorder %v235_v63, 1563 }
  0x71   : > { %v394_v14 = vsel %vm266_vm9, %v298_v7, 0.0  ;;  %v207_v15 = vadd.s32 248, %v814_v2  ;;  %v238_v16 = vadd.s32 %v818_v4, %v205_v5  ;;  %vm268_vm11 = vcmp.lt.s32.totalorder %v236_v6, 1563 }
  0x72   : > { %v415_v30 = vadd.f32 %v414_v25, %v383_v21  ;;  %v395_v19 = vsel %vm267_vm10, %v299_v12, 0.0  ;;  %v239_v20 = vadd.s32 %v818_v4, %v206_v10  ;;  %vm269_vm12 = vcmp.lt.s32.totalorder %v237_v11, 1563  ;;  %v301_v21 = vld [vmem:[%s807_s30 + $0xe0] sm:$0xff]  ;;  %v302_v25 = vld [vmem:[%s807_s30 + $0xe8] sm:$0xff] }
  0x73   : > { %v396_v23 = vsel %vm268_vm11, %v300_v17, 0.0  ;;  %v240_v24 = vadd.s32 %v818_v4, %v207_v15  ;;  %vm270_vm13 = vcmp.lt.s32.totalorder %v238_v16, 1563  ;;  %v397_v2 = vsel %vm269_vm12, %v301_v21, 0.0 }
  0x74   : > { %v416_v35 = vadd.f32 %v415_v30, %v384_v26  ;;  %vm271_vm14 = vcmp.lt.s32.totalorder %v239_v20, 1563  ;;  %v398_v29 = vsel %vm270_vm13, %v302_v25, 0.0  ;;  %v304_v30 = vld [vmem:[%s807_s30 + $0xf8] sm:$0xff] }
  0x75   : > { %vm272_vm15 = vcmp.lt.s32.totalorder %v240_v24, 1563  ;;  %v399_v32 = vsel %vm271_vm14, %v303_v27, 0.0 }
  0x76   : > { %v417_v40 = vadd.f32 %v416_v35, %v385_v31  ;;  %v400_v34 = vsel %vm272_vm15, %v304_v30, 0.0 }
  0x78   : > { %v418_v45 = vadd.f32 %v417_v40, %v386_v36  ;;  %v401_v36 = vld [vmem:[#allocation5] sm:$0xff] }
  0x7a   : > { %v419_v50 = vadd.f32 %v418_v45, %v387_v41 }
  0x7c   : > { %v420_v55 = vadd.f32 %v419_v50, %v388_v46 }
  0x7e   : > { %v421_v60 = vadd.f32 %v420_v55, %v389_v51 }
  0x80   : > { %v422_v1 = vadd.f32 %v421_v60, %v390_v56 }
  0x82   : > { %v423_v8 = vadd.f32 %v422_v1, %v391_v61 }
  0x84   : > { %v424_v13 = vadd.f32 %v423_v8, %v392_v3 }
  0x86   : > { %v425_v18 = vadd.f32 %v424_v13, %v393_v9 }
  0x88   : > { %v426_v22 = vadd.f32 %v425_v18, %v394_v14 }
  0x8a   : > { %v427_v26 = vadd.f32 %v426_v22, %v395_v19 }
  0x8c   : > { %v428_v28 = vadd.f32 %v427_v26, %v396_v23 }
  0x8e   : > { %v429_v31 = vadd.f32 %v428_v28, %v397_v2 }
  0x90   : > { %v430_v33 = vadd.f32 %v429_v31, %v398_v29 }
  0x92   : > { %v431_v35 = vadd.f32 %v430_v33, %v399_v32 }
  0x94   : > { %v432_v4 = vadd.f32 %v431_v35, %v400_v34 }
  0x96   : > { %v433_v37 = vadd.f32 %v432_v4, %v401_v36 }
  0x98   : > { %434 = vst [vmem:[#allocation5] sm:$0xff] %v433_v37 }
  0x99   : > { %624 = shalt.err (!%p621_p0)
}
  0x9a   : > { %s625_s13 = scalar_lea.hbm %s962_s1, 128 }
  0x9b   : > { %p626_p2 = scmp.ne.s32.totalorder %s962_s1, %s625_s13  ;;  %p631_p4 = scmp.lt.u32.totalorder %s625_s13, %s962_s1 }
  0x9d   : > { %p627_p3 = pnand %p626_p2, %p917_p8 }
  0x9f   : > { %p628_p1 = pneg %p627_p3 }
  0xa1   : > { %p633_p5 = pnand %p631_p4, %p628_p1 }
  0xa3   : > { %636 = shalt.err (!%p633_p5)
}
  0xa4   : > { %526 = dma.vmem_to_hbm [thread:$0]  (%p917_p8), %s445_s16, 128, %s962_s1, [#allocation4]  }
  0xa5   : > { %666 = dma.done.wait (%p917_p8), [#allocation4], 128  }
  0xa6   : > { %668 = vsyncadd (%p917_p8), [#allocation4], 4294967168 }
  0xa7 PF: > { %s15_s11 = sadd.s32 1, %s691_s11   ;;  %s965_s6 = smov %s675_s7 }
  0xa8   : > { %p12_p12 = scmp.ge.s32.totalorder %s15_s11, 9   ;;  %s966_s7 = smov %s679_s8 }
  0xa9   : > { %s967_s8 = smov %s759_s19  ;;  %s968_s9 = smov %s687_s10 }
  0xaa   : > { %s969_s10 = smov %s971_s12  ;;  %14 = sbr.rel (!%p12_p12) target bundleno = 5 (0x5), region = 66 }
  0xb1   :  { %457 = vsyncpa [#allocation3], 1 }
  0xb2   :  { %459 = vsyncpa [#allocation3 + $0x1], 1 }
  0xb3   :  { %460 = vsyncpa [#allocation4], 1 }
  0xb4   :  { %462 = vsyncpa [#allocation4 + $0x1], 1 }

</bundles_post_ra>
